<compile_context>
chip_gen: v7x
topology: tpu7x:2x2x1
jax: 0.10.0
libtpu: 0.0.40
codegen_flags: <defaults>
</compile_context>

<pallas_src>
import math
from functools import partial

import jax
import jax.numpy as jnp
from jax.experimental import pallas as pl
from jax.experimental.pallas import tpu as pltpu

LANE = 128
SUBLANE = 8
MAX_TILE_B = 512          # keep h + f32 accumulator inside the 64-vreg file

_SUPPORTED_OUT_ACTS = (None, "tanh", "sigmoid", "relu")


def _round_up(x: int, m: int) -> int:
    return ((x + m - 1) // m) * m


def _num_parallel_tiles() -> int:
    """2 on v7x (2 TensorCores/chip) so the batch grid can shard across both;
    1 on v5e/v6e (single TensorCore)."""
    try:
        kind = jax.devices()[0].device_kind.lower()
    except Exception:
        return 1
    return 2 if ("v7" in kind or "7x" in kind) else 1


def _choose_tile_b(batch: int) -> int:
    """Default batch tile: whole batch in one grid step (per-step overhead
    dominates this kernel), capped at MAX_TILE_B; two tiles on v7x."""
    b8 = _round_up(max(batch, 1), SUBLANE)
    n_tiles = _num_parallel_tiles()
    if n_tiles > 1 and b8 >= n_tiles * SUBLANE:
        tile = _round_up(-(-b8 // n_tiles), SUBLANE)
    else:
        tile = b8
    return min(tile, MAX_TILE_B)


def make_fcnetwork_kernel(num_layers: int, in_dim_p: int, output_activation):
    """Fused MLP kernel.

    Refs: (w_ref [L, D_pad, D_pad], b_ref [L, 1, D_pad],
           x_ref [TILE_B, in_dim_p], o_ref [TILE_B, D_pad])
    """

    def kernel(w_ref, b_ref, x_ref, o_ref):
        # Layer 0: contract the un-padded input features directly against the
        # matching rows of the zero-padded first weight matrix (no in-kernel
        # feature padding, no 128-lane input slab in HBM).
        h = jnp.dot(x_ref[...], w_ref[0, :in_dim_p, :],
                    preferred_element_type=jnp.float32) + b_ref[0]
        if num_layers > 1:
            h = jnp.maximum(h, 0.0)
        for i in range(1, num_layers):                    # static unroll
            h = jnp.dot(h, w_ref[i], preferred_element_type=jnp.float32) + b_ref[i]
            if i < num_layers - 1:                        # ReLU between hidden layers
                h = jnp.maximum(h, 0.0)
        if output_activation == "tanh":
            h = jnp.tanh(h)
        elif output_activation == "sigmoid":
            h = jax.nn.sigmoid(h)
        elif output_activation == "relu":
            h = jnp.maximum(h, 0.0)
        o_ref[...] = h.astype(o_ref.dtype)                # lane-dense full-width store

    return kernel


def pack_params(params):
    """One-time packing of PyTorch-layout params.

    params: list of (W, b) with W: [out, in] (nn.Linear layout), b: [out].
    Returns (w_packed [L, D_pad, D_pad], b_packed [L, 1, D_pad], in_dim, out_dim).
    Weights are transposed to [in, out] and zero-padded ONCE here, so the
    per-call forward path contains no transposes / per-layer operands.
    """
    num_layers = len(params)
    in_dims = [int(w.shape[1]) for w, _ in params]
    out_dims = [int(w.shape[0]) for w, _ in params]
    d_pad = _round_up(max(in_dims + out_dims), LANE)

    # TODO(synk): pack as bf16 for large hidden dims on v6e/v7x (bf16-native MXU).
    w_packed = jnp.zeros((num_layers, d_pad, d_pad), jnp.float32)
    b_packed = jnp.zeros((num_layers, 1, d_pad), jnp.float32)
    for i, (w, b) in enumerate(params):
        w = jnp.asarray(w, jnp.float32)
        b = jnp.asarray(b, jnp.float32)
        w_packed = w_packed.at[i, : w.shape[1], : w.shape[0]].set(w.T)
        b_packed = b_packed.at[i, 0, : b.shape[0]].set(b)
    return w_packed, b_packed, in_dims[0], out_dims[-1]


@partial(jax.jit, static_argnames=("in_dim", "out_dim", "output_activation", "tile_b"))
def fcnetwork_forward(x, w_packed, b_packed, *, in_dim, out_dim,
                      output_activation=None, tile_b=None):
    """Forward pass. x: [B, in_dim]."""
    if output_activation not in _SUPPORTED_OUT_ACTS:
        raise ValueError(f"Unsupported output_activation: {output_activation!r}")

    num_layers, d_pad, _ = w_packed.shape
    batch = x.shape[0]
    in_dim_p = _round_up(in_dim, SUBLANE)

    if tile_b is None:
        tile_b = _choose_tile_b(batch)
    # Always a multiple of 8 sublanes (also for user-supplied tile_b).
    tile_b = _round_up(max(int(tile_b), SUBLANE), SUBLANE)
    b_pad = _round_up(max(batch, 1), tile_b)

    # Materialize a (small) padded copy of x only when actually needed; in the
    # common case (batch tiles exactly, in_dim % 8 == 0) the kernel reads the
    # caller's array directly — no extra HBM round trip for a 128-lane slab.
    x = x.astype(jnp.float32)
    if b_pad != batch or in_dim_p != in_dim:
        x_in = jnp.zeros((b_pad, in_dim_p), jnp.float32).at[:batch, :in_dim].set(x)
    else:
        x_in = x

    kernel = make_fcnetwork_kernel(num_layers, in_dim_p, output_activation)
    grid = (b_pad // tile_b,)

    out = pl.pallas_call(
        kernel,
        out_shape=jax.ShapeDtypeStruct((b_pad, d_pad), jnp.float32),
        grid=grid,
        in_specs=[
            # Weight stack & biases: same block every grid step -> stay
            # VMEM-resident; single-buffered since the index never changes.
            pl.BlockSpec((num_layers, d_pad, d_pad), lambda i: (0, 0, 0),
                         pipeline_mode=pl.Buffered(1)),
            pl.BlockSpec((num_layers, 1, d_pad), lambda i: (0, 0, 0),
                         pipeline_mode=pl.Buffered(1)),
            # Input read un-padded: last block dim == full array dim.
            pl.BlockSpec((tile_b, in_dim_p), lambda i: (i, 0)),
        ],
        out_specs=pl.BlockSpec((tile_b, d_pad), lambda i: (i, 0)),
        compiler_params=pltpu.CompilerParams(
            dimension_semantics=("parallel",)),
    )(w_packed, b_packed, x_in)

    # Padded lane-dense slab -> real output; inside the same jit so downstream
    # consumers fuse the slice instead of a separate HBM pass.
    return out[:batch, :out_dim]


def init_fcnetwork_params(key, dims):
    """Deterministic init mirroring PyTorch nn.Linear defaults:
    W, b ~ U(-1/sqrt(fan_in), 1/sqrt(fan_in)); W stored as [out, in]."""
    params = []
    for i in range(len(dims) - 1):
        fan_in, fan_out = dims[i], dims[i + 1]
        bound = 1.0 / math.sqrt(fan_in)
        key, kw, kb = jax.random.split(key, 3)
        w = jax.random.uniform(kw, (fan_out, fan_in), jnp.float32, -bound, bound)
        b = jax.random.uniform(kb, (fan_out,), jnp.float32, -bound, bound)
        params.append((w, b))
    return params


def fcnetwork_reference(x, params, output_activation=None):
    """Pure-JAX reference (PyTorch-layout params) for correctness checking."""
    h = x
    n = len(params)
    for i, (w, b) in enumerate(params):
        h = h @ w.T + b
        if i < n - 1:
            h = jnp.maximum(h, 0.0)
    if output_activation == "tanh":
        h = jnp.tanh(h)
    elif output_activation == "sigmoid":
        h = jax.nn.sigmoid(h)
    elif output_activation == "relu":
        h = jnp.maximum(h, 0.0)
    return h


if __name__ == "__main__":
    # DDPG-actor-like config: obs_dim=8, two hidden layers of 32, action_dim=4,
    # tanh output, batched over 256 observations.
    dims = (8, 32, 32, 4)
    batch = 256
    output_activation = "tanh"

    key = jax.random.PRNGKey(0)
    key, kx = jax.random.split(key)
    x = jax.random.normal(kx, (batch, dims[0]), dtype=jnp.float32)
    params = init_fcnetwork_params(key, dims)

    # One-time packing (no transposes in the per-call path).
    w_packed, b_packed, in_dim, out_dim = pack_params(params)

    out = fcnetwork_forward(
        x, w_packed, b_packed,
        in_dim=in_dim, out_dim=out_dim,
        output_activation=output_activation)
    out = jax.block_until_ready(out)

    ref = fcnetwork_reference(x, params, output_activation)
    assert out.shape == (batch, dims[-1]), out.shape
    assert jnp.allclose(out, ref, atol=1e-4, rtol=1e-4)

    print("KERNEL_OK")
</pallas_src>

<mosaic_0001>
module attributes {stable_mosaic.version = 11 : i64} {
  func.func @kernel(%arg0: i32, %arg1: memref<3x128x128xf32, #tpu.memory_space<vmem>>, %arg2: memref<3x1x128xf32, #tpu.memory_space<vmem>>, %arg3: memref<256x8xf32, #tpu.memory_space<vmem>>, %arg4: memref<256x128xf32, #tpu.memory_space<vmem>>) attributes {dimension_semantics = [#tpu.dimension_semantics<parallel>], iteration_bounds = array<i64: 1>, scalar_prefetch = 0 : i64, scratch_operands = 0 : i64, tpu.core_type = #tpu.core_type<tc>, window_params = [{pipeline_mode = #tpu.pipeline_mode<synchronous>, transform_indices = @transform_0, window_bounds = array<i64: 3, 128, 128>}, {pipeline_mode = #tpu.pipeline_mode<synchronous>, transform_indices = @transform_1, window_bounds = array<i64: 3, 1, 128>}, {transform_indices = @transform_2, window_bounds = array<i64: 256, 8>}, {transform_indices = @transform_3, window_bounds = array<i64: 256, 128>}]} {
    %c0 = arith.constant 0 : index
    %c0_0 = arith.constant 0 : index
    %0 = vector.load %arg3[%c0, %c0_0] : memref<256x8xf32, #tpu.memory_space<vmem>>, vector<256x8xf32>
    %c0_1 = arith.constant 0 : index
    %c0_2 = arith.constant 0 : index
    %c0_3 = arith.constant 0 : index
    %1 = vector.load %arg1[%c0_1, %c0_2, %c0_3] : memref<3x128x128xf32, #tpu.memory_space<vmem>>, vector<1x8x128xf32>
    %2 = vector.shape_cast %1 : vector<1x8x128xf32> to vector<8x128xf32>
    %cst = arith.constant dense<0.000000e+00> : vector<256x128xf32>
    %3 = tpu.matmul %0, %2, %cst {dimension_numbers = #tpu.dot_dimension_numbers<[1], [0], [0], [1], [0, 0, 1, 1], [], []>} : vector<256x8xf32>, vector<8x128xf32>, vector<256x128xf32> -> vector<256x128xf32>
    %c0_4 = arith.constant 0 : index
    %c0_5 = arith.constant 0 : index
    %c0_6 = arith.constant 0 : index
    %4 = vector.load %arg2[%c0_4, %c0_5, %c0_6] : memref<3x1x128xf32, #tpu.memory_space<vmem>>, vector<1x1x128xf32>
    %5 = vector.shape_cast %4 : vector<1x1x128xf32> to vector<1x128xf32>
    %6 = vector.broadcast %5 : vector<1x128xf32> to vector<256x128xf32>
    %7 = arith.addf %3, %6 : vector<256x128xf32>
    %cst_7 = arith.constant 0.000000e+00 : f32
    %8 = vector.broadcast %cst_7 : f32 to vector<256x128xf32>
    %9 = arith.maximumf %7, %8 : vector<256x128xf32>
    %c1 = arith.constant 1 : index
    %c0_8 = arith.constant 0 : index
    %c0_9 = arith.constant 0 : index
    %10 = vector.load %arg1[%c1, %c0_8, %c0_9] : memref<3x128x128xf32, #tpu.memory_space<vmem>>, vector<1x128x128xf32>
    %11 = vector.shape_cast %10 : vector<1x128x128xf32> to vector<128x128xf32>
    %cst_10 = arith.constant dense<0.000000e+00> : vector<256x128xf32>
    %12 = tpu.matmul %9, %11, %cst_10 {dimension_numbers = #tpu.dot_dimension_numbers<[1], [0], [0], [1], [0, 0, 1, 1], [], []>} : vector<256x128xf32>, vector<128x128xf32>, vector<256x128xf32> -> vector<256x128xf32>
    %c1_11 = arith.constant 1 : index
    %c0_12 = arith.constant 0 : index
    %c0_13 = arith.constant 0 : index
    %13 = vector.load %arg2[%c1_11, %c0_12, %c0_13] : memref<3x1x128xf32, #tpu.memory_space<vmem>>, vector<1x1x128xf32>
    %14 = vector.shape_cast %13 : vector<1x1x128xf32> to vector<1x128xf32>
    %15 = vector.broadcast %14 : vector<1x128xf32> to vector<256x128xf32>
    %16 = arith.addf %12, %15 : vector<256x128xf32>
    %cst_14 = arith.constant 0.000000e+00 : f32
    %17 = vector.broadcast %cst_14 : f32 to vector<256x128xf32>
    %18 = arith.maximumf %16, %17 : vector<256x128xf32>
    %c2 = arith.constant 2 : index
    %c0_15 = arith.constant 0 : index
    %c0_16 = arith.constant 0 : index
    %19 = vector.load %arg1[%c2, %c0_15, %c0_16] : memref<3x128x128xf32, #tpu.memory_space<vmem>>, vector<1x128x128xf32>
    %20 = vector.shape_cast %19 : vector<1x128x128xf32> to vector<128x128xf32>
    %cst_17 = arith.constant dense<0.000000e+00> : vector<256x128xf32>
    %21 = tpu.matmul %18, %20, %cst_17 {dimension_numbers = #tpu.dot_dimension_numbers<[1], [0], [0], [1], [0, 0, 1, 1], [], []>} : vector<256x128xf32>, vector<128x128xf32>, vector<256x128xf32> -> vector<256x128xf32>
    %c2_18 = arith.constant 2 : index
    %c0_19 = arith.constant 0 : index
    %c0_20 = arith.constant 0 : index
    %22 = vector.load %arg2[%c2_18, %c0_19, %c0_20] : memref<3x1x128xf32, #tpu.memory_space<vmem>>, vector<1x1x128xf32>
    %23 = vector.shape_cast %22 : vector<1x1x128xf32> to vector<1x128xf32>
    %24 = vector.broadcast %23 : vector<1x128xf32> to vector<256x128xf32>
    %25 = arith.addf %21, %24 : vector<256x128xf32>
    %26 = math.tanh %25 : vector<256x128xf32>
    %c0_21 = arith.constant 0 : index
    %c0_22 = arith.constant 0 : index
    %27 = vector.load %arg4[%c0_21, %c0_22] : memref<256x128xf32, #tpu.memory_space<vmem>>, vector<256x128xf32>
    tpu.vector_store %arg4[%c0_21, %c0_22], %26 {strides = array<i32>} : memref<256x128xf32, #tpu.memory_space<vmem>>, vector<256x128xf32>,
    return
  }
  func.func @transform_0(%arg0: i32) -> (i32, i32, i32) {
    %c0_i32 = arith.constant 0 : i32
    %c0_i32_0 = arith.constant 0 : i32
    %c0_i32_1 = arith.constant 0 : i32
    %c0_i32_2 = arith.constant 0 : i32
    return %c0_i32, %c0_i32_0, %c0_i32_1 : i32, i32, i32
  }
  func.func @transform_1(%arg0: i32) -> (i32, i32, i32) {
    %c0_i32 = arith.constant 0 : i32
    %c0_i32_0 = arith.constant 0 : i32
    %c0_i32_1 = arith.constant 0 : i32
    %c0_i32_2 = arith.constant 0 : i32
    return %c0_i32, %c0_i32_0, %c0_i32_1 : i32, i32, i32
  }
  func.func @transform_2(%arg0: i32) -> (i32, i32) {
    %c0_i32 = arith.constant 0 : i32
    %c0_i32_0 = arith.constant 0 : i32
    return %arg0, %c0_i32 : i32, i32
  }
  func.func @transform_3(%arg0: i32) -> (i32, i32) {
    %c0_i32 = arith.constant 0 : i32
    %c0_i32_0 = arith.constant 0 : i32
    return %arg0, %c0_i32 : i32, i32
  }
}

</mosaic_0001>

<bundles_post_ra>
// kernel: fcnetwork_forward.1
= control target key start
LH: loop header
LB: loop body
LE: loop exit
PB: predicated region body
PF: predicated region fallthrough
CT: control target
= control target key end

     0   :  { %8 = vsyncpa [#allocation3], 0  ;;  %s1556_s12 = smov [#allocation2]   ;;  %s1938_s0 = inlined_call_operand.hbm [shape: f32[3,128,128], index: 0, kind: input, shape index: {}]   ;;  %s1939_s1 = inlined_call_operand.vmem [shape: f32[3,1,128], index: 1, kind: input, shape index: {}]   ;;  %s1940_s2 = inlined_call_operand.vmem [shape: f32[256,8], index: 2, kind: input, shape index: {}]   ;;  %s1941_s3 = inlined_call_operand.vmem [shape: f32[256,128], index: 3, kind: output, shape index: {}]  }
   0x1   :  { %s14_s13 = sshll.u32 %s1556_s12, 4  ;;  %s1532_s16 = scalar_lea.hbm %s1938_s0, 6144  ;;  %s15_s13 = int_to_ptr.vmem [resolvable:$true] %s14_s13 }
   0x2   :  { %p1533_p0 = scmp.ne.s32.totalorder %s1938_s0, %s1532_s16  ;;  %p1536_p1 = scmp.lt.u32.totalorder %s1532_s16, %s1938_s0 }
   0x4   :  { %p1538_p2 = pnand %p1536_p1, %p1533_p0 }
   0x6   :  { %1541 = shalt.err (!%p1538_p2)
}
   0x7   :  { %s1542_s21 = scalar_lea.vmem %s15_s13, 6144  ;;  %p1547_p4 = scmp.lt.s32.totalorder %s15_s13, %s15_s13 }
   0x8   :  { %p1543_p3 = scmp.ne.s32.totalorder %s15_s13, %s1542_s21  ;;  %p1548_p5 = scmp.lt.s32.totalorder %s1542_s21, %s1542_s21 }
   0xa   :  { %p1549_p6 = por %p1548_p5, %p1547_p4 }
   0xc   :  { %p1550_p7 = pnand %p1549_p6, %p1543_p3 }
   0xe   :  { %1553 = shalt.err (!%p1550_p7)
}
   0xf   :  { %s1557_s22 = smov 128   ;;  %s1558_s23 = smov 8  }
  0x10   :  { %20 = dma.hbm_to_vmem [thread:$0]  %s1938_s0, 6144, %s15_s13, [#allocation3], %s1557_s22, %s1557_s22, %s1558_s23  }
  0x11   :  { %1554 = dma.done.wait [#allocation3], 6144  }
  0x12   :  { %1555 = vsyncadd [#allocation3], 4294961152  ;;  %vm68_vm0 = vcmask 64512   ;;  %v60_v0 = vld [vmem:[#allocation2] sm:$0xff]  ;;  %v29_v2 = vld [vmem:[%s1940_s2 + $0x8] sm:$0xff] }
  0x13   :  { %v28_v1 = vld [vmem:[%s1940_s2] sm:$0xff]  ;;  %1189 = vmatprep.subr.mxu0 %v60_v0  ;;  %v30_v3 = vld [vmem:[%s1940_s2 + $0x10] sm:$0xff]  ;;  %1463 = vmatprep.subr.mxu1 %v60_v0  ;;  %v31_v4 = vld [vmem:[%s1940_s2 + $0x18] sm:$0xff] }
  0x14   :  { %1191 = vmatprep.mubr.msk.f32.mxu0 %vm68_vm0, %v28_v1  ;;  %1190 = vmatpush3.msra.mxu0 %v60_v0  ;;  %v32_v5 = vld [vmem:[%s1940_s2 + $0x20] sm:$0xff]  ;;  %v45_v7 = vld [vmem:[%s1940_s2 + $0x88] sm:$0xff]  ;;  %v46_v8 = vld [vmem:[%s1940_s2 + $0x90] sm:$0xff] }
  0x15   :  { %1192 = vmatmul.mubr.msk.f32.vlgmr.msra.gmra.mrb[0].mxu0 %vm68_vm0, %v29_v2  ;;  %1464 = vmatpush3.msra.mxu1 %v60_v0  ;;  %v44_v6 = vld [vmem:[%s1940_s2 + $0x80] sm:$0xff]  ;;  %v33_v9 = vld [vmem:[%s1940_s2 + $0x28] sm:$0xff]  ;;  %v47_v10 = vld [vmem:[%s1940_s2 + $0x98] sm:$0xff] }
  0x16   :  { %1194 = vmatprep.mubr.msk.f32.mxu0 %vm68_vm0, %v30_v3  ;;  %1215 = vmatprep.mubr.msk.f32.mxu1 %vm68_vm0, %v44_v6  ;;  %v34_v11 = vld [vmem:[%s1940_s2 + $0x30] sm:$0xff]  ;;  %v48_v12 = vld [vmem:[%s1940_s2 + $0xa0] sm:$0xff]  ;;  %v424_v14 = vld [vmem:[#allocation2 + $0x88] sm:$0xff] }
  0x17   :  { %1216 = vmatmul.mubr.msk.f32.vlgmr.msra.gmra.mrb[0].mxu1 %vm68_vm0, %v45_v7  ;;  %v423_v13 = vld [vmem:[#allocation2 + $0x80] sm:$0xff]  ;;  %v425_v15 = vld [vmem:[#allocation2 + $0x90] sm:$0xff]  ;;  %v35_v16 = vld [vmem:[%s1940_s2 + $0x38] sm:$0xff] }
  0x18   :  { %1218 = vmatprep.mubr.msk.f32.mxu1 %vm68_vm0, %v46_v8  ;;  %v49_v17 = vld [vmem:[%s1940_s2 + $0xa8] sm:$0xff]  ;;  %v1399_v18 = vpack.c.bf16 %v424_v14, %v423_v13  ;;  %v426_v19 = vld [vmem:[#allocation2 + $0x98] sm:$0xff]  ;;  %v36_v20 = vld [vmem:[%s1940_s2 + $0x40] sm:$0xff] }
  0x19   :  { %1195 = vmatmul.mubr.msk.f32.gmra.mrb[2].mxu0 %vm68_vm0, %v31_v4  ;;  %v50_v21 = vld [vmem:[%s1940_s2 + $0xb0] sm:$0xff]  ;;  %v1403_v22 = vpack.c.bf16 %v426_v19, %v425_v15  ;;  %v427_v23 = vld [vmem:[#allocation2 + $0xa0] sm:$0xff]  ;;  %v428_v24 = vld [vmem:[#allocation2 + $0xa8] sm:$0xff] }
  0x1a   :  { %1197 = vmatprep.mubr.msk.f32.mxu0 %vm68_vm0, %v32_v5  ;;  %1400 = vmatprep.subr.bf16.mxu1 %v1399_v18  ;;  %v37_v25 = vld [vmem:[%s1940_s2 + $0x48] sm:$0xff]  ;;  %v51_v26 = vld [vmem:[%s1940_s2 + $0xb8] sm:$0xff]  ;;  %v38_v27 = vld [vmem:[%s1940_s2 + $0x50] sm:$0xff]  ;;  %v1407_v29 = vpack.c.bf16 %v428_v24, %v427_v23 }
  0x1b   :  { %1219 = vmatmul.mubr.msk.f32.gmra.mrb[2].mxu1 %vm68_vm0, %v47_v10  ;;  %v52_v28 = vld [vmem:[%s1940_s2 + $0xc0] sm:$0xff]  ;;  %v429_v30 = vld [vmem:[#allocation2 + $0xb0] sm:$0xff]  ;;  %v430_v31 = vld [vmem:[#allocation2 + $0xb8] sm:$0xff] }
  0x1c   :  { %1221 = vmatprep.mubr.msk.f32.mxu1 %vm68_vm0, %v48_v12  ;;  %1402 = vmatpush3.bf16.msra.mxu1 %v1399_v18  ;;  %v39_v32 = vld [vmem:[%s1940_s2 + $0x58] sm:$0xff]  ;;  %v53_v33 = vld [vmem:[%s1940_s2 + $0xc8] sm:$0xff]  ;;  %v40_v34 = vld [vmem:[%s1940_s2 + $0x60] sm:$0xff]  ;;  %v1411_v36 = vpack.c.bf16 %v430_v31, %v429_v30 }
  0x1d   :  { %1198 = vmatmul.mubr.msk.f32.gmra.mrb[4].mxu0 %vm68_vm0, %v33_v9  ;;  %1404 = vmatprep.subr.bf16.mxu1 %v1403_v22  ;;  %v54_v35 = vld [vmem:[%s1940_s2 + $0xd0] sm:$0xff]  ;;  %v431_v37 = vld [vmem:[#allocation2 + $0xc0] sm:$0xff]  ;;  %v432_v38 = vld [vmem:[#allocation2 + $0xc8] sm:$0xff] }
  0x1e   :  { %1200 = vmatprep.mubr.msk.f32.mxu0 %vm68_vm0, %v34_v11  ;;  %v41_v39 = vld [vmem:[%s1940_s2 + $0x68] sm:$0xff]  ;;  %v55_v40 = vld [vmem:[%s1940_s2 + $0xd8] sm:$0xff]  ;;  %v42_v41 = vld [vmem:[%s1940_s2 + $0x70] sm:$0xff]  ;;  %v1415_v43 = vpack.c.bf16 %v432_v38, %v431_v37 }
  0x1f   :  { %1222 = vmatmul.mubr.msk.f32.gmra.mrb[4].mxu1 %vm68_vm0, %v49_v17  ;;  %v56_v42 = vld [vmem:[%s1940_s2 + $0xe0] sm:$0xff]  ;;  %v433_v44 = vld [vmem:[#allocation2 + $0xd0] sm:$0xff]  ;;  %v434_v45 = vld [vmem:[#allocation2 + $0xd8] sm:$0xff] }
  0x20   :  { %1224 = vmatprep.mubr.msk.f32.mxu1 %vm68_vm0, %v50_v21  ;;  %1406 = vmatpush3.bf16.msra.mxu1 %v1403_v22  ;;  %v43_v46 = vld [vmem:[%s1940_s2 + $0x78] sm:$0xff]  ;;  %v57_v47 = vld [vmem:[%s1940_s2 + $0xe8] sm:$0xff]  ;;  %v58_v48 = vld [vmem:[%s1940_s2 + $0xf0] sm:$0xff]  ;;  %v1419_v49 = vpack.c.bf16 %v434_v45, %v433_v44 }
  0x21   :  { %1201 = vmatmul.mubr.msk.f32.gmra.mrb[6].mxu0 %vm68_vm0, %v35_v16  ;;  %1408 = vmatprep.subr.bf16.mxu1 %v1407_v29  ;;  %v435_v50 = vld [vmem:[#allocation2 + $0xe0] sm:$0xff]  ;;  %v436_v51 = vld [vmem:[#allocation2 + $0xe8] sm:$0xff]  ;;  %v59_v52 = vld [vmem:[%s1940_s2 + $0xf8] sm:$0xff] }
  0x22   :  { %1203 = vmatprep.mubr.msk.f32.mxu0 %vm68_vm0, %v36_v20  ;;  %v1423_v53 = vpack.c.bf16 %v436_v51, %v435_v50  ;;  %v437_v54 = vld [vmem:[#allocation2 + $0xf0] sm:$0xff]  ;;  %v438_v55 = vld [vmem:[#allocation2 + $0xf8] sm:$0xff]  ;;  %v705_v57 = vld [vmem:[#allocation2 + $0x100] sm:$0xff] }
  0x23   :  { %1225 = vmatmul.mubr.msk.f32.gmra.mrb[6].mxu1 %vm68_vm0, %v51_v26  ;;  %v1427_v56 = vpack.c.bf16 %v438_v55, %v437_v54  ;;  %v706_v58 = vld [vmem:[#allocation2 + $0x108] sm:$0xff]  ;;  %v707_v59 = vld [vmem:[#allocation2 + $0x110] sm:$0xff]  ;;  %v708_v61 = vld [vmem:[#allocation2 + $0x118] sm:$0xff] }
  0x24   :  { %1227 = vmatprep.mubr.msk.f32.mxu1 %vm68_vm0, %v52_v28  ;;  %1410 = vmatpush3.bf16.msra.mxu1 %v1407_v29  ;;  %v1431_v60 = vpack.c.bf16 %v706_v58, %v705_v57  ;;  %v1435_v62 = vpack.c.bf16 %v708_v61, %v707_v59  ;;  %v709_v63 = vld [vmem:[#allocation2 + $0x120] sm:$0xff]  ;;  %v710_v0 = vld [vmem:[#allocation2 + $0x128] sm:$0xff]  ;;  %v711_v2 = vld [vmem:[#allocation2 + $0x130] sm:$0xff] }
  0x25   :  { %1204 = vmatmul.mubr.msk.f32.gmra.mrb[8].mxu0 %vm68_vm0, %v37_v25  ;;  %1412 = vmatprep.subr.bf16.mxu1 %v1411_v36  ;;  %v1439_v1 = vpack.c.bf16 %v710_v0, %v709_v63  ;;  %v712_v3 = vld [vmem:[#allocation2 + $0x138] sm:$0xff]  ;;  %v713_v5 = vld [vmem:[#allocation2 + $0x140] sm:$0xff]  ;;  %v714_v6 = vld [vmem:[#allocation2 + $0x148] sm:$0xff] }
  0x26   :  { %1206 = vmatprep.mubr.msk.f32.mxu0 %vm68_vm0, %v38_v27  ;;  %1432 = vmatprep.subr.bf16.mxu0 %v1431_v60  ;;  %v1443_v4 = vpack.c.bf16 %v712_v3, %v711_v2  ;;  %v1447_v7 = vpack.c.bf16 %v714_v6, %v713_v5  ;;  %v715_v8 = vld [vmem:[#allocation2 + $0x150] sm:$0xff]  ;;  %v716_v9 = vld [vmem:[#allocation2 + $0x158] sm:$0xff]  ;;  %v717_v11 = vld [vmem:[#allocation2 + $0x160] sm:$0xff] }
  0x27   :  { %1228 = vmatmul.mubr.msk.f32.gmra.mrb[8].mxu1 %vm68_vm0, %v53_v33  ;;  %1434 = vmatpush3.bf16.msra.mxu0 %v1431_v60  ;;  %v1451_v10 = vpack.c.bf16 %v716_v9, %v715_v8  ;;  %v718_v12 = vld [vmem:[#allocation2 + $0x168] sm:$0xff]  ;;  %v1722_v14 = vld [vmem:[%s1939_s1] ss:$0 sm:$0xff] }
  0x28   :  { %1230 = vmatprep.mubr.msk.f32.mxu1 %vm68_vm0, %v54_v35  ;;  %1414 = vmatpush3.bf16.msra.mxu1 %v1411_v36  ;;  %v1455_v13 = vpack.c.bf16 %v718_v12, %v717_v11 }
  0x29   :  { %1207 = vmatmul.mubr.msk.f32.gmra.mrb[10].mxu0 %vm68_vm0, %v39_v32  ;;  %1416 = vmatprep.subr.bf16.mxu1 %v1415_v43 }
  0x2a   :  { %1209 = vmatprep.mubr.msk.f32.mxu0 %vm68_vm0, %v40_v34  ;;  %1436 = vmatprep.subr.bf16.mxu0 %v1435_v62 }
  0x2b   :  { %1231 = vmatmul.mubr.msk.f32.gmra.mrb[10].mxu1 %vm68_vm0, %v55_v40  ;;  %1438 = vmatpush3.bf16.msra.mxu0 %v1435_v62 }
  0x2c   :  { %1233 = vmatprep.mubr.msk.f32.mxu1 %vm68_vm0, %v56_v42  ;;  %1418 = vmatpush3.bf16.msra.mxu1 %v1415_v43 }
  0x2d   :  { %1210 = vmatmul.mubr.msk.f32.gmra.mrb[12].mxu0 %vm68_vm0, %v41_v39  ;;  %1420 = vmatprep.subr.bf16.mxu1 %v1419_v49 }
  0x2e   :  { %1212 = vmatprep.mubr.msk.f32.mxu0 %vm68_vm0, %v42_v41  ;;  %1440 = vmatprep.subr.bf16.mxu0 %v1439_v1 }
  0x2f   :  { %1234 = vmatmul.mubr.msk.f32.gmra.mrb[12].mxu1 %vm68_vm0, %v57_v47  ;;  %1442 = vmatpush3.bf16.msra.mxu0 %v1439_v1 }
  0x30   :  { %1236 = vmatprep.mubr.msk.f32.mxu1 %vm68_vm0, %v58_v48  ;;  %1422 = vmatpush3.bf16.msra.mxu1 %v1419_v49 }
  0x31   :  { %1213 = vmatmul.mubr.msk.f32.gmra.mrb[14].mxu0 %vm68_vm0, %v43_v46  ;;  %1424 = vmatprep.subr.bf16.mxu1 %v1423_v53 }
  0x32   :  { %1444 = vmatprep.subr.bf16.mxu0 %v1443_v4 }
  0x33   :  { %1237 = vmatmul.mubr.msk.f32.gmra.mrb[14].mxu1 %vm68_vm0, %v59_v52  ;;  %1446 = vmatpush3.bf16.msra.mxu0 %v1443_v4 }
  0x34   :  { %1426 = vmatpush3.bf16.msra.mxu1 %v1423_v53  ;;  %1448 = vmatprep.subr.bf16.mxu0 %v1447_v7 }
  0x35   :  { %1428 = vmatprep.subr.bf16.mxu1 %v1427_v56 }
  0x37   :  { %1450 = vmatpush3.bf16.msra.mxu0 %v1447_v7 }
  0x38   :  { %1430 = vmatpush3.bf16.msra.mxu1 %v1427_v56  ;;  %1452 = vmatprep.subr.bf16.mxu0 %v1451_v10 }
  0x3b   :  { %1454 = vmatpush3.bf16.msra.mxu0 %v1451_v10 }
  0x3c   :  { %1456 = vmatprep.subr.bf16.mxu0 %v1455_v13 }
  0x3f   :  { %1458 = vmatpush3.bf16.msra.mxu0 %v1455_v13 }
  0xe8   :  { %v1193_v15 = vpop.f32.mrb[0].mxu0 }
  0xe9   :  { %v237_v16 = vadd.f32 %v1193_v15, %v1722_v14  ;;  %v231_v17 = vpop.f32.mrb[1].mxu0 }
  0xea   :  { %v232_v18 = vadd.f32 %v1722_v14, %v231_v17  ;;  %v1726_v21 = vpop.f32.mrb[0].mxu1 }
  0xeb   :  { %v391_v22 = vmax.f32 %v237_v16, 0.0  ;;  %v311_v25 = vpop.f32.mrb[1].mxu1 }
  0xec   :  { %v390_v19 = vmax.f32 %v232_v18, 0.0  ;;  %v1196_v20 = vpop.f32.mrb[2].mxu0  ;;  %v312_v5 = vadd.f32 %v1722_v14, %v311_v25  ;;  %v317_v18 = vadd.f32 %v1726_v21, %v1722_v14 }
  0xed   :  { %v247_v23 = vadd.f32 %v1196_v20, %v1722_v14  ;;  %v241_v24 = vpop.f32.mrb[3].mxu0 }
  0xee   :  { %v242_v26 = vadd.f32 %v1722_v14, %v241_v24  ;;  %1271 = vmatprep.mubr.f32.mxu1 %v390_v19  ;;  %v1730_v29 = vpop.f32.mrb[2].mxu1  ;;  %v406_v13 = vmax.f32 %v312_v5, 0.0 }
  0xef   :  { %1272 = vmatmul.mubr.f32.vlgmr.msra.gmra.mrb[16].mxu1 %v391_v22  ;;  %v393_v30 = vmax.f32 %v247_v23, 0.0  ;;  %v321_v33 = vpop.f32.mrb[3].mxu1  ;;  %v407_v23 = vmax.f32 %v317_v18, 0.0  ;;  %v327_v24 = vadd.f32 %v1730_v29, %v1722_v14 }
  0xf0   :  { %v392_v27 = vmax.f32 %v242_v26, 0.0  ;;  %v1199_v28 = vpop.f32.mrb[4].mxu0  ;;  %v322_v15 = vadd.f32 %v1722_v14, %v321_v33 }
  0xf1   :  { %v257_v31 = vadd.f32 %v1199_v28, %v1722_v14  ;;  %v251_v32 = vpop.f32.mrb[5].mxu0 }
  0xf2   :  { %v252_v34 = vadd.f32 %v1722_v14, %v251_v32  ;;  %1274 = vmatprep.mubr.f32.mxu1 %v392_v27  ;;  %v1734_v37 = vpop.f32.mrb[4].mxu1  ;;  %v408_v20 = vmax.f32 %v322_v15, 0.0  ;;  %v409_v27 = vmax.f32 %v327_v24, 0.0 }
  0xf3   :  { %1275 = vmatmul.mubr.f32.gmra.mrb[18].mxu1 %v393_v30  ;;  %v395_v38 = vmax.f32 %v257_v31, 0.0  ;;  %v331_v41 = vpop.f32.mrb[5].mxu1  ;;  %v337_v21 = vadd.f32 %v1734_v37, %v1722_v14 }
  0xf4   :  { %v394_v35 = vmax.f32 %v252_v34, 0.0  ;;  %v1202_v36 = vpop.f32.mrb[6].mxu0  ;;  %v332_v22 = vadd.f32 %v1722_v14, %v331_v41 }
  0xf5   :  { %v267_v39 = vadd.f32 %v1202_v36, %v1722_v14  ;;  %v261_v40 = vpop.f32.mrb[7].mxu0  ;;  %v411_v31 = vmax.f32 %v337_v21, 0.0 }
  0xf6   :  { %v262_v42 = vadd.f32 %v1722_v14, %v261_v40  ;;  %1277 = vmatprep.mubr.f32.mxu1 %v394_v35  ;;  %v1738_v45 = vpop.f32.mrb[6].mxu1  ;;  %v410_v25 = vmax.f32 %v332_v22, 0.0 }
  0xf7   :  { %1278 = vmatmul.mubr.f32.gmra.mrb[20].mxu1 %v395_v38  ;;  %v397_v46 = vmax.f32 %v267_v39, 0.0  ;;  %v341_v49 = vpop.f32.mrb[7].mxu1  ;;  %v347_v32 = vadd.f32 %v1738_v45, %v1722_v14 }
  0xf8   :  { %v396_v43 = vmax.f32 %v262_v42, 0.0  ;;  %v1205_v44 = vpop.f32.mrb[8].mxu0  ;;  %v342_v26 = vadd.f32 %v1722_v14, %v341_v49  ;;  %v720_v49 = vld [vmem:[#allocation2 + $0x178] sm:$0xff] }
  0xf9   :  { %v277_v47 = vadd.f32 %v1205_v44, %v1722_v14  ;;  %v271_v48 = vpop.f32.mrb[9].mxu0  ;;  %v413_v34 = vmax.f32 %v347_v32, 0.0 }
  0xfa   :  { %v272_v50 = vadd.f32 %v1722_v14, %v271_v48  ;;  %1280 = vmatprep.mubr.f32.mxu1 %v396_v43  ;;  %v1229_v53 = vpop.f32.mrb[8].mxu1  ;;  %v412_v28 = vmax.f32 %v342_v26, 0.0  ;;  %v719_v48 = vld [vmem:[#allocation2 + $0x170] sm:$0xff] }
  0xfb   :  { %1281 = vmatmul.mubr.f32.gmra.mrb[22].mxu1 %v397_v46  ;;  %v399_v54 = vmax.f32 %v277_v47, 0.0  ;;  %v351_v57 = vpop.f32.mrb[9].mxu1  ;;  %v357_v35 = vadd.f32 %v1229_v53, %v1722_v14 }
  0xfc   :  { %v398_v51 = vmax.f32 %v272_v50, 0.0  ;;  %v1208_v52 = vpop.f32.mrb[10].mxu0  ;;  %v352_v30 = vadd.f32 %v1722_v14, %v351_v57  ;;  %v1459_v50 = vpack.c.bf16 %v720_v49, %v719_v48 }
  0xfd   :  { %v287_v55 = vadd.f32 %v1208_v52, %v1722_v14  ;;  %v281_v56 = vpop.f32.mrb[11].mxu0  ;;  %v415_v38 = vmax.f32 %v357_v35, 0.0 }
  0xfe   :  { %v282_v58 = vadd.f32 %v1722_v14, %v281_v56  ;;  %1283 = vmatprep.mubr.f32.mxu1 %v398_v51  ;;  %v1232_v61 = vpop.f32.mrb[10].mxu1  ;;  %v414_v29 = vmax.f32 %v352_v30, 0.0  ;;  %1460 = vmatprep.subr.bf16.mxu0 %v1459_v50  ;;  %v1771_v51 = vld [vmem:[%s1939_s1 + $0x1] ss:$0 sm:$0xff] }
  0xff   :  { %1284 = vmatmul.mubr.f32.gmra.mrb[24].mxu1 %v399_v54  ;;  %v401_v62 = vmax.f32 %v287_v55, 0.0  ;;  %v361_v1 = vpop.f32.mrb[11].mxu1  ;;  %v367_v39 = vadd.f32 %v1232_v61, %v1722_v14  ;;  %1462 = vmatpush3.bf16.msra.mxu0 %v1459_v50 }
 0x100   :  { %v400_v59 = vmax.f32 %v282_v58, 0.0  ;;  %v1211_v60 = vpop.f32.mrb[12].mxu0  ;;  %v362_v33 = vadd.f32 %v1722_v14, %v361_v1 }
 0x101   :  { %v297_v63 = vadd.f32 %v1211_v60, %v1722_v14  ;;  %v291_v0 = vpop.f32.mrb[13].mxu0  ;;  %v417_v42 = vmax.f32 %v367_v39, 0.0 }
 0x102   :  { %v292_v2 = vadd.f32 %v1722_v14, %v291_v0  ;;  %1286 = vmatprep.mubr.f32.mxu1 %v400_v59  ;;  %v1235_v6 = vpop.f32.mrb[12].mxu1  ;;  %v416_v36 = vmax.f32 %v362_v33, 0.0 }
 0x103   :  { %1287 = vmatmul.mubr.f32.gmra.mrb[26].mxu1 %v401_v62  ;;  %v403_v7 = vmax.f32 %v297_v63, 0.0  ;;  %v371_v10 = vpop.f32.mrb[13].mxu1  ;;  %v377_v43 = vadd.f32 %v1235_v6, %v1722_v14 }
 0x104   :  { %v402_v3 = vmax.f32 %v292_v2, 0.0  ;;  %v1214_v4 = vpop.f32.mrb[14].mxu0  ;;  %v372_v37 = vadd.f32 %v1722_v14, %v371_v10 }
 0x105   :  { %v307_v8 = vadd.f32 %v1214_v4, %v1722_v14  ;;  %v301_v9 = vpop.f32.mrb[15].mxu0  ;;  %v419_v45 = vmax.f32 %v377_v43, 0.0 }
 0x106   :  { %v302_v11 = vadd.f32 %v1722_v14, %v301_v9  ;;  %1289 = vmatprep.mubr.f32.mxu1 %v402_v3  ;;  %v1238_v16 = vpop.f32.mrb[14].mxu1  ;;  %v418_v40 = vmax.f32 %v372_v37, 0.0 }
 0x107   :  { %1290 = vmatmul.mubr.f32.gmra.mrb[28].mxu1 %v403_v7  ;;  %v405_v17 = vmax.f32 %v307_v8, 0.0  ;;  %v381_v19 = vpop.f32.mrb[15].mxu1  ;;  %v387_v46 = vadd.f32 %v1238_v16, %v1722_v14 }
 0x108   :  { %v404_v12 = vmax.f32 %v302_v11, 0.0  ;;  %v382_v41 = vadd.f32 %v1722_v14, %v381_v19 }
 0x109   :  { %v421_v47 = vmax.f32 %v387_v46, 0.0 }
 0x10a   :  { %1292 = vmatprep.mubr.f32.mxu1 %v404_v12  ;;  %v420_v44 = vmax.f32 %v382_v41, 0.0 }
 0x10b   :  { %1293 = vmatmul.mubr.f32.gmra.mrb[30].mxu1 %v405_v17 }
 0x10c   :  { %1295 = vmatprep.mubr.f32.mxu1 %v406_v13 }
 0x10f   :  { %1296 = vmatmul.mubr.f32.gmra.mrb[32].mxu1 %v407_v23 }
 0x110   :  { %1298 = vmatprep.mubr.f32.mxu1 %v408_v20 }
 0x113   :  { %1299 = vmatmul.mubr.f32.gmra.mrb[34].mxu1 %v409_v27 }
 0x114   :  { %1301 = vmatprep.mubr.f32.mxu1 %v410_v25 }
 0x117   :  { %1302 = vmatmul.mubr.f32.gmra.mrb[36].mxu1 %v411_v31 }
 0x118   :  { %1304 = vmatprep.mubr.f32.mxu1 %v412_v28 }
 0x11b   :  { %1305 = vmatmul.mubr.f32.gmra.mrb[38].mxu1 %v413_v34 }
 0x11c   :  { %1307 = vmatprep.mubr.f32.mxu1 %v414_v29 }
 0x11f   :  { %1308 = vmatmul.mubr.f32.gmra.mrb[40].mxu1 %v415_v38 }
 0x120   :  { %1310 = vmatprep.mubr.f32.mxu1 %v416_v36 }
 0x123   :  { %1311 = vmatmul.mubr.f32.gmra.mrb[42].mxu1 %v417_v42 }
 0x124   :  { %1313 = vmatprep.mubr.f32.mxu1 %v418_v40 }
 0x127   :  { %1314 = vmatmul.mubr.f32.gmra.mrb[44].mxu1 %v419_v45 }
 0x128   :  { %1316 = vmatprep.mubr.f32.mxu1 %v420_v44 }
 0x12b   :  { %1317 = vmatmul.mubr.f32.gmra.mrb[46].mxu1 %v421_v47 }
 0x1c2   :  { %v1273_v52 = vpop.f32.mrb[16].mxu1 }
 0x1c3   :  { %v519_v53 = vadd.f32 %v1273_v52, %v1771_v51  ;;  %v513_v54 = vpop.f32.mrb[17].mxu1 }
 0x1c4   :  { %v514_v14 = vadd.f32 %v1771_v51, %v513_v54 }
 0x1c5   :  { %v673_v57 = vmax.f32 %v519_v53, 0.0 }
 0x1c6   :  { %v672_v55 = vmax.f32 %v514_v14, 0.0  ;;  %v1276_v56 = vpop.f32.mrb[18].mxu1 }
 0x1c7   :  { %v529_v58 = vadd.f32 %v1276_v56, %v1771_v51  ;;  %v523_v59 = vpop.f32.mrb[19].mxu1 }
 0x1c8   :  { %v524_v60 = vadd.f32 %v1771_v51, %v523_v59  ;;  %1351 = vmatprep.mubr.f32.mxu0 %v672_v55 }
 0x1c9   :  { %1352 = vmatmul.mubr.f32.vlgmr.msra.gmra.mrb[16].mxu0 %v673_v57  ;;  %v675_v63 = vmax.f32 %v529_v58, 0.0 }
 0x1ca   :  { %v674_v61 = vmax.f32 %v524_v60, 0.0  ;;  %v1279_v62 = vpop.f32.mrb[20].mxu1 }
 0x1cb   :  { %v539_v0 = vadd.f32 %v1279_v62, %v1771_v51  ;;  %v533_v1 = vpop.f32.mrb[21].mxu1 }
 0x1cc   :  { %v534_v2 = vadd.f32 %v1771_v51, %v533_v1  ;;  %1354 = vmatprep.mubr.f32.mxu0 %v674_v61 }
 0x1cd   :  { %1355 = vmatmul.mubr.f32.gmra.mrb[18].mxu0 %v675_v63  ;;  %v677_v5 = vmax.f32 %v539_v0, 0.0 }
 0x1ce   :  { %v676_v3 = vmax.f32 %v534_v2, 0.0  ;;  %v1282_v4 = vpop.f32.mrb[22].mxu1 }
 0x1cf   :  { %v549_v6 = vadd.f32 %v1282_v4, %v1771_v51  ;;  %v543_v7 = vpop.f32.mrb[23].mxu1 }
 0x1d0   :  { %v544_v8 = vadd.f32 %v1771_v51, %v543_v7  ;;  %1357 = vmatprep.mubr.f32.mxu0 %v676_v3 }
 0x1d1   :  { %1358 = vmatmul.mubr.f32.gmra.mrb[20].mxu0 %v677_v5  ;;  %v679_v11 = vmax.f32 %v549_v6, 0.0 }
 0x1d2   :  { %v678_v9 = vmax.f32 %v544_v8, 0.0  ;;  %v1285_v10 = vpop.f32.mrb[24].mxu1 }
 0x1d3   :  { %v559_v12 = vadd.f32 %v1285_v10, %v1771_v51  ;;  %v553_v13 = vpop.f32.mrb[25].mxu1 }
 0x1d4   :  { %v554_v15 = vadd.f32 %v1771_v51, %v553_v13  ;;  %1360 = vmatprep.mubr.f32.mxu0 %v678_v9 }
 0x1d5   :  { %1361 = vmatmul.mubr.f32.gmra.mrb[22].mxu0 %v679_v11  ;;  %v681_v18 = vmax.f32 %v559_v12, 0.0 }
 0x1d6   :  { %v680_v16 = vmax.f32 %v554_v15, 0.0  ;;  %v1288_v17 = vpop.f32.mrb[26].mxu1 }
 0x1d7   :  { %v569_v19 = vadd.f32 %v1288_v17, %v1771_v51  ;;  %v563_v20 = vpop.f32.mrb[27].mxu1 }
 0x1d8   :  { %v564_v22 = vadd.f32 %v1771_v51, %v563_v20  ;;  %1363 = vmatprep.mubr.f32.mxu0 %v680_v16 }
 0x1d9   :  { %1364 = vmatmul.mubr.f32.gmra.mrb[24].mxu0 %v681_v18  ;;  %v683_v25 = vmax.f32 %v569_v19, 0.0 }
 0x1da   :  { %v682_v23 = vmax.f32 %v564_v22, 0.0  ;;  %v1291_v24 = vpop.f32.mrb[28].mxu1  ;;  %v1808_v22 = vld [vmem:[%s1939_s1 + $0x2] ss:$0 sm:$0xff] }
 0x1db   :  { %v579_v26 = vadd.f32 %v1291_v24, %v1771_v51  ;;  %v573_v27 = vpop.f32.mrb[29].mxu1 }
 0x1dc   :  { %v574_v21 = vadd.f32 %v1771_v51, %v573_v27  ;;  %1366 = vmatprep.mubr.f32.mxu0 %v682_v23 }
 0x1dd   :  { %1367 = vmatmul.mubr.f32.gmra.mrb[26].mxu0 %v683_v25  ;;  %v685_v31 = vmax.f32 %v579_v26, 0.0 }
 0x1de   :  { %v684_v28 = vmax.f32 %v574_v21, 0.0  ;;  %v1294_v30 = vpop.f32.mrb[30].mxu1 }
 0x1df   :  { %v589_v32 = vadd.f32 %v1294_v30, %v1771_v51  ;;  %v583_v29 = vpop.f32.mrb[31].mxu1 }
 0x1e0   :  { %v584_v33 = vadd.f32 %v1771_v51, %v583_v29  ;;  %1369 = vmatprep.mubr.f32.mxu0 %v684_v28 }
 0x1e1   :  { %1370 = vmatmul.mubr.f32.gmra.mrb[28].mxu0 %v685_v31  ;;  %v687_v36 = vmax.f32 %v589_v32, 0.0 }
 0x1e2   :  { %v686_v34 = vmax.f32 %v584_v33, 0.0  ;;  %v1297_v35 = vpop.f32.mrb[32].mxu1 }
 0x1e3   :  { %v599_v37 = vadd.f32 %v1297_v35, %v1771_v51  ;;  %v593_v38 = vpop.f32.mrb[33].mxu1 }
 0x1e4   :  { %v594_v39 = vadd.f32 %v1771_v51, %v593_v38  ;;  %1372 = vmatprep.mubr.f32.mxu0 %v686_v34 }
 0x1e5   :  { %1373 = vmatmul.mubr.f32.gmra.mrb[30].mxu0 %v687_v36  ;;  %v689_v42 = vmax.f32 %v599_v37, 0.0 }
 0x1e6   :  { %v688_v40 = vmax.f32 %v594_v39, 0.0  ;;  %v1300_v41 = vpop.f32.mrb[34].mxu1 }
 0x1e7   :  { %v609_v43 = vadd.f32 %v1300_v41, %v1771_v51  ;;  %v603_v44 = vpop.f32.mrb[35].mxu1 }
 0x1e8   :  { %v604_v45 = vadd.f32 %v1771_v51, %v603_v44  ;;  %1375 = vmatprep.mubr.f32.mxu0 %v688_v40 }
 0x1e9   :  { %1376 = vmatmul.mubr.f32.gmra.mrb[32].mxu0 %v689_v42  ;;  %v691_v48 = vmax.f32 %v609_v43, 0.0 }
 0x1ea   :  { %v690_v46 = vmax.f32 %v604_v45, 0.0  ;;  %v1303_v47 = vpop.f32.mrb[36].mxu1 }
 0x1eb   :  { %v619_v49 = vadd.f32 %v1303_v47, %v1771_v51  ;;  %v613_v50 = vpop.f32.mrb[37].mxu1 }
 0x1ec   :  { %v614_v52 = vadd.f32 %v1771_v51, %v613_v50  ;;  %1378 = vmatprep.mubr.f32.mxu0 %v690_v46 }
 0x1ed   :  { %1379 = vmatmul.mubr.f32.gmra.mrb[34].mxu0 %v691_v48  ;;  %v693_v14 = vmax.f32 %v619_v49, 0.0 }
 0x1ee   :  { %v692_v53 = vmax.f32 %v614_v52, 0.0  ;;  %v1306_v54 = vpop.f32.mrb[38].mxu1 }
 0x1ef   :  { %v629_v55 = vadd.f32 %v1306_v54, %v1771_v51  ;;  %v623_v56 = vpop.f32.mrb[39].mxu1 }
 0x1f0   :  { %v624_v57 = vadd.f32 %v1771_v51, %v623_v56  ;;  %1381 = vmatprep.mubr.f32.mxu0 %v692_v53 }
 0x1f1   :  { %1382 = vmatmul.mubr.f32.gmra.mrb[36].mxu0 %v693_v14  ;;  %v695_v60 = vmax.f32 %v629_v55, 0.0 }
 0x1f2   :  { %v694_v58 = vmax.f32 %v624_v57, 0.0  ;;  %v1309_v59 = vpop.f32.mrb[40].mxu1 }
 0x1f3   :  { %v639_v61 = vadd.f32 %v1309_v59, %v1771_v51  ;;  %v633_v62 = vpop.f32.mrb[41].mxu1 }
 0x1f4   :  { %v634_v63 = vadd.f32 %v1771_v51, %v633_v62  ;;  %1384 = vmatprep.mubr.f32.mxu0 %v694_v58 }
 0x1f5   :  { %1385 = vmatmul.mubr.f32.gmra.mrb[38].mxu0 %v695_v60  ;;  %v697_v2 = vmax.f32 %v639_v61, 0.0 }
 0x1f6   :  { %v696_v0 = vmax.f32 %v634_v63, 0.0  ;;  %v1312_v1 = vpop.f32.mrb[42].mxu1 }
 0x1f7   :  { %v649_v3 = vadd.f32 %v1312_v1, %v1771_v51  ;;  %v643_v4 = vpop.f32.mrb[43].mxu1 }
 0x1f8   :  { %v644_v5 = vadd.f32 %v1771_v51, %v643_v4  ;;  %1387 = vmatprep.mubr.f32.mxu0 %v696_v0 }
 0x1f9   :  { %1388 = vmatmul.mubr.f32.gmra.mrb[40].mxu0 %v697_v2  ;;  %v699_v8 = vmax.f32 %v649_v3, 0.0 }
 0x1fa   :  { %v698_v6 = vmax.f32 %v644_v5, 0.0  ;;  %v1315_v7 = vpop.f32.mrb[44].mxu1 }
 0x1fb   :  { %v659_v9 = vadd.f32 %v1315_v7, %v1771_v51  ;;  %v653_v10 = vpop.f32.mrb[45].mxu1 }
 0x1fc   :  { %v654_v11 = vadd.f32 %v1771_v51, %v653_v10  ;;  %1390 = vmatprep.mubr.f32.mxu0 %v698_v6 }
 0x1fd   :  { %1391 = vmatmul.mubr.f32.gmra.mrb[42].mxu0 %v699_v8  ;;  %v701_v15 = vmax.f32 %v659_v9, 0.0 }
 0x1fe   :  { %v700_v12 = vmax.f32 %v654_v11, 0.0  ;;  %v1318_v13 = vpop.f32.mrb[46].mxu1 }
 0x1ff   :  { %v669_v16 = vadd.f32 %v1318_v13, %v1771_v51  ;;  %v663_v17 = vpop.f32.mrb[47].mxu1 }
 0x200   :  { %v664_v18 = vadd.f32 %v1771_v51, %v663_v17  ;;  %1393 = vmatprep.mubr.f32.mxu0 %v700_v12 }
 0x201   :  { %1394 = vmatmul.mubr.f32.gmra.mrb[44].mxu0 %v701_v15  ;;  %v703_v20 = vmax.f32 %v669_v16, 0.0 }
 0x202   :  { %v702_v19 = vmax.f32 %v664_v18, 0.0 }
 0x204   :  { %1396 = vmatprep.mubr.f32.mxu0 %v702_v19 }
 0x205   :  { %1397 = vmatmul.mubr.f32.gmra.mrb[46].mxu0 %v703_v20 }
 0x29c   :  { %v1353_v23 = vpop.f32.mrb[16].mxu0 }
 0x29d   :  { %v801_v24 = vadd.f32 %v1353_v23, %v1808_v22  ;;  %v795_v25 = vpop.f32.mrb[17].mxu0 }
 0x29e   :  { %v796_v26 = vadd.f32 %v1808_v22, %v795_v25 }
 0x29f   :  { %1468 = vtanh.f32 %v801_v24 }
 0x2a0   :  { %1470 = vtanh.f32 %v796_v26  ;;  %v1356_v51 = vpop.f32.mrb[18].mxu0 }
 0x2a1   :  { %v811_v27 = vadd.f32 %v1356_v51, %v1808_v22  ;;  %v805_v21 = vpop.f32.mrb[19].mxu0 }
 0x2a2   :  { %v806_v28 = vadd.f32 %v1808_v22, %v805_v21 }
 0x2a3   :  { %1472 = vtanh.f32 %v811_v27 }
 0x2a4   :  { %1474 = vtanh.f32 %v806_v28  ;;  %v1359_v30 = vpop.f32.mrb[20].mxu0 }
 0x2a5   :  { %v821_v31 = vadd.f32 %v1359_v30, %v1808_v22  ;;  %v815_v32 = vpop.f32.mrb[21].mxu0 }
 0x2a6   :  { %v816_v29 = vadd.f32 %v1808_v22, %v815_v32 }
 0x2a7   :  { %1476 = vtanh.f32 %v821_v31 }
 0x2a8   :  { %1478 = vtanh.f32 %v816_v29  ;;  %v1362_v33 = vpop.f32.mrb[22].mxu0 }
 0x2a9   :  { %v1469_v34 = vpop.eup %1468  ;;  %v831_v35 = vadd.f32 %v1362_v33, %v1808_v22  ;;  %v825_v36 = vpop.f32.mrb[23].mxu0 }
 0x2aa   :  { %v1471_v37 = vpop.eup %1470  ;;  %987 = vst [vmem:[%s1941_s3 + $0x8] sm:$0xff] %v1469_v34  ;;  %v826_v38 = vadd.f32 %v1808_v22, %v825_v36 }
 0x2ab   :  { %986 = vst [vmem:[%s1941_s3] sm:$0xff] %v1471_v37  ;;  %1480 = vtanh.f32 %v831_v35 }
 0x2ac   :  { %1482 = vtanh.f32 %v826_v38  ;;  %v1365_v39 = vpop.f32.mrb[24].mxu0 }
 0x2ad   :  { %v1473_v40 = vpop.eup %1472  ;;  %v841_v41 = vadd.f32 %v1365_v39, %v1808_v22  ;;  %v835_v42 = vpop.f32.mrb[25].mxu0 }
 0x2ae   :  { %v1475_v43 = vpop.eup %1474  ;;  %989 = vst [vmem:[%s1941_s3 + $0x18] sm:$0xff] %v1473_v40  ;;  %v836_v44 = vadd.f32 %v1808_v22, %v835_v42 }
 0x2af   :  { %988 = vst [vmem:[%s1941_s3 + $0x10] sm:$0xff] %v1475_v43  ;;  %1484 = vtanh.f32 %v841_v41 }
 0x2b0   :  { %1486 = vtanh.f32 %v836_v44  ;;  %v1368_v45 = vpop.f32.mrb[26].mxu0 }
 0x2b1   :  { %v1477_v46 = vpop.eup %1476  ;;  %v851_v47 = vadd.f32 %v1368_v45, %v1808_v22  ;;  %v845_v48 = vpop.f32.mrb[27].mxu0 }
 0x2b2   :  { %v1479_v49 = vpop.eup %1478  ;;  %991 = vst [vmem:[%s1941_s3 + $0x28] sm:$0xff] %v1477_v46  ;;  %v846_v50 = vadd.f32 %v1808_v22, %v845_v48 }
 0x2b3   :  { %990 = vst [vmem:[%s1941_s3 + $0x20] sm:$0xff] %v1479_v49  ;;  %1488 = vtanh.f32 %v851_v47 }
 0x2b4   :  { %1490 = vtanh.f32 %v846_v50  ;;  %v1371_v52 = vpop.f32.mrb[28].mxu0 }
 0x2b5   :  { %v1481_v53 = vpop.eup %1480  ;;  %v861_v54 = vadd.f32 %v1371_v52, %v1808_v22  ;;  %v855_v14 = vpop.f32.mrb[29].mxu0 }
 0x2b6   :  { %v1483_v55 = vpop.eup %1482  ;;  %993 = vst [vmem:[%s1941_s3 + $0x38] sm:$0xff] %v1481_v53  ;;  %v856_v56 = vadd.f32 %v1808_v22, %v855_v14 }
 0x2b7   :  { %992 = vst [vmem:[%s1941_s3 + $0x30] sm:$0xff] %v1483_v55  ;;  %1492 = vtanh.f32 %v861_v54 }
 0x2b8   :  { %1494 = vtanh.f32 %v856_v56  ;;  %v1374_v57 = vpop.f32.mrb[30].mxu0 }
 0x2b9   :  { %v1485_v58 = vpop.eup %1484  ;;  %v871_v59 = vadd.f32 %v1374_v57, %v1808_v22  ;;  %v865_v60 = vpop.f32.mrb[31].mxu0 }
 0x2ba   :  { %v1487_v61 = vpop.eup %1486  ;;  %995 = vst [vmem:[%s1941_s3 + $0x48] sm:$0xff] %v1485_v58  ;;  %v866_v62 = vadd.f32 %v1808_v22, %v865_v60 }
 0x2bb   :  { %994 = vst [vmem:[%s1941_s3 + $0x40] sm:$0xff] %v1487_v61  ;;  %1496 = vtanh.f32 %v871_v59 }
 0x2bc   :  { %1498 = vtanh.f32 %v866_v62  ;;  %v1377_v63 = vpop.f32.mrb[32].mxu0 }
 0x2bd   :  { %v1489_v0 = vpop.eup %1488  ;;  %v881_v1 = vadd.f32 %v1377_v63, %v1808_v22  ;;  %v875_v2 = vpop.f32.mrb[33].mxu0 }
 0x2be   :  { %v1491_v3 = vpop.eup %1490  ;;  %997 = vst [vmem:[%s1941_s3 + $0x58] sm:$0xff] %v1489_v0  ;;  %v876_v4 = vadd.f32 %v1808_v22, %v875_v2 }
 0x2bf   :  { %996 = vst [vmem:[%s1941_s3 + $0x50] sm:$0xff] %v1491_v3  ;;  %1500 = vtanh.f32 %v881_v1 }
 0x2c0   :  { %1502 = vtanh.f32 %v876_v4  ;;  %v1380_v5 = vpop.f32.mrb[34].mxu0 }
 0x2c1   :  { %v1493_v6 = vpop.eup %1492  ;;  %v891_v7 = vadd.f32 %v1380_v5, %v1808_v22  ;;  %v885_v8 = vpop.f32.mrb[35].mxu0 }
 0x2c2   :  { %v1495_v9 = vpop.eup %1494  ;;  %999 = vst [vmem:[%s1941_s3 + $0x68] sm:$0xff] %v1493_v6  ;;  %v886_v10 = vadd.f32 %v1808_v22, %v885_v8 }
 0x2c3   :  { %998 = vst [vmem:[%s1941_s3 + $0x60] sm:$0xff] %v1495_v9  ;;  %1504 = vtanh.f32 %v891_v7 }
 0x2c4   :  { %1506 = vtanh.f32 %v886_v10  ;;  %v1383_v11 = vpop.f32.mrb[36].mxu0 }
 0x2c5   :  { %v1497_v12 = vpop.eup %1496  ;;  %v901_v13 = vadd.f32 %v1383_v11, %v1808_v22  ;;  %v895_v15 = vpop.f32.mrb[37].mxu0 }
 0x2c6   :  { %v1499_v16 = vpop.eup %1498  ;;  %1001 = vst [vmem:[%s1941_s3 + $0x78] sm:$0xff] %v1497_v12  ;;  %v896_v17 = vadd.f32 %v1808_v22, %v895_v15 }
 0x2c7   :  { %1000 = vst [vmem:[%s1941_s3 + $0x70] sm:$0xff] %v1499_v16  ;;  %1508 = vtanh.f32 %v901_v13 }
 0x2c8   :  { %1510 = vtanh.f32 %v896_v17  ;;  %v1386_v18 = vpop.f32.mrb[38].mxu0 }
 0x2c9   :  { %v1501_v19 = vpop.eup %1500  ;;  %v911_v20 = vadd.f32 %v1386_v18, %v1808_v22  ;;  %v905_v23 = vpop.f32.mrb[39].mxu0 }
 0x2ca   :  { %v1503_v24 = vpop.eup %1502  ;;  %1003 = vst [vmem:[%s1941_s3 + $0x88] sm:$0xff] %v1501_v19  ;;  %v906_v25 = vadd.f32 %v1808_v22, %v905_v23 }
 0x2cb   :  { %1002 = vst [vmem:[%s1941_s3 + $0x80] sm:$0xff] %v1503_v24  ;;  %1512 = vtanh.f32 %v911_v20 }
 0x2cc   :  { %1514 = vtanh.f32 %v906_v25  ;;  %v1389_v26 = vpop.f32.mrb[40].mxu0 }
 0x2cd   :  { %v1505_v51 = vpop.eup %1504  ;;  %v921_v27 = vadd.f32 %v1389_v26, %v1808_v22  ;;  %v915_v21 = vpop.f32.mrb[41].mxu0 }
 0x2ce   :  { %v1507_v28 = vpop.eup %1506  ;;  %1005 = vst [vmem:[%s1941_s3 + $0x98] sm:$0xff] %v1505_v51  ;;  %v916_v30 = vadd.f32 %v1808_v22, %v915_v21 }
 0x2cf   :  { %1004 = vst [vmem:[%s1941_s3 + $0x90] sm:$0xff] %v1507_v28  ;;  %1516 = vtanh.f32 %v921_v27 }
 0x2d0   :  { %1518 = vtanh.f32 %v916_v30  ;;  %v1392_v31 = vpop.f32.mrb[42].mxu0 }
 0x2d1   :  { %v1509_v32 = vpop.eup %1508  ;;  %v931_v29 = vadd.f32 %v1392_v31, %v1808_v22  ;;  %v925_v33 = vpop.f32.mrb[43].mxu0 }
 0x2d2   :  { %v1511_v34 = vpop.eup %1510  ;;  %1007 = vst [vmem:[%s1941_s3 + $0xa8] sm:$0xff] %v1509_v32  ;;  %v926_v35 = vadd.f32 %v1808_v22, %v925_v33 }
 0x2d3   :  { %1006 = vst [vmem:[%s1941_s3 + $0xa0] sm:$0xff] %v1511_v34  ;;  %1520 = vtanh.f32 %v931_v29 }
 0x2d4   :  { %1522 = vtanh.f32 %v926_v35  ;;  %v1395_v36 = vpop.f32.mrb[44].mxu0 }
 0x2d5   :  { %v1513_v37 = vpop.eup %1512  ;;  %v941_v38 = vadd.f32 %v1395_v36, %v1808_v22  ;;  %v935_v39 = vpop.f32.mrb[45].mxu0 }
 0x2d6   :  { %v1515_v40 = vpop.eup %1514  ;;  %1009 = vst [vmem:[%s1941_s3 + $0xb8] sm:$0xff] %v1513_v37  ;;  %v936_v41 = vadd.f32 %v1808_v22, %v935_v39 }
 0x2d7   :  { %1008 = vst [vmem:[%s1941_s3 + $0xb0] sm:$0xff] %v1515_v40  ;;  %1524 = vtanh.f32 %v941_v38 }
 0x2d8   :  { %1526 = vtanh.f32 %v936_v41  ;;  %v1398_v42 = vpop.f32.mrb[46].mxu0 }
 0x2d9   :  { %v1517_v43 = vpop.eup %1516  ;;  %v951_v44 = vadd.f32 %v1398_v42, %v1808_v22  ;;  %v945_v45 = vpop.f32.mrb[47].mxu0 }
 0x2da   :  { %v1519_v46 = vpop.eup %1518  ;;  %1011 = vst [vmem:[%s1941_s3 + $0xc8] sm:$0xff] %v1517_v43  ;;  %v946_v47 = vadd.f32 %v1808_v22, %v945_v45 }
 0x2db   :  { %1010 = vst [vmem:[%s1941_s3 + $0xc0] sm:$0xff] %v1519_v46  ;;  %1528 = vtanh.f32 %v951_v44 }
 0x2dc   :  { %1530 = vtanh.f32 %v946_v47 }
 0x2dd   :  { %v1521_v48 = vpop.eup %1520 }
 0x2de   :  { %v1523_v49 = vpop.eup %1522  ;;  %1013 = vst [vmem:[%s1941_s3 + $0xd8] sm:$0xff] %v1521_v48 }
 0x2df   :  { %1012 = vst [vmem:[%s1941_s3 + $0xd0] sm:$0xff] %v1523_v49 }
 0x2e1   :  { %v1525_v50 = vpop.eup %1524 }
 0x2e2   :  { %v1527_v52 = vpop.eup %1526  ;;  %1015 = vst [vmem:[%s1941_s3 + $0xe8] sm:$0xff] %v1525_v50 }
 0x2e3   :  { %1014 = vst [vmem:[%s1941_s3 + $0xe0] sm:$0xff] %v1527_v52 }
 0x2e5   :  { %v1529_v22 = vpop.eup %1528 }
 0x2e6   :  { %v1531_v53 = vpop.eup %1530  ;;  %1017 = vst [vmem:[%s1941_s3 + $0xf8] sm:$0xff] %v1529_v22 }
 0x2e7   :  { %1016 = vst [vmem:[%s1941_s3 + $0xf0] sm:$0xff] %v1531_v53 }
 0x2e8   :  { %1022 = vsyncpa [#allocation3], 1 }

</bundles_post_ra>
